<compile_context>
chip_gen: v5e
topology: v5e:2x2
jax: 0.10.0
libtpu: 0.0.40
codegen_flags: <defaults>
</compile_context>

<pallas_src>
import jax
import jax.numpy as jnp
import numpy as np
from jax import lax
from jax.experimental import pallas as pl
from jax.experimental.pallas import tpu as pltpu


def _conv_bn_kernel(w_ref, b_ref, p_ref, o_ref):
    # w_ref: (Co, K*K*C)   conv weights with BN scale folded in
    # b_ref: (Co, 1)       folded BN bias (beta - running_mean * scale)
    # p_ref: (K*K*C, T)    im2col patches tile; lanes = flattened (n, h, w)
    # o_ref: (Co, T)       lane-dense output slab
    acc = jnp.dot(w_ref[...], p_ref[...], preferred_element_type=jnp.float32)
    o_ref[...] = (acc + b_ref[...]).astype(o_ref.dtype)


def last_sficonvb_forward(x_s, x_f, w_s, w_f, gamma, beta, run_mean, run_var,
                          eps=1e-5, compute_dtype=jnp.float32,
                          max_tile_lanes=2048):
    """x_s: (N, Cs, H, W), x_f: (N, Cf, H, W)  (NCHW, like PyTorch).
    w_s: (Co, Cs, K, K), w_f: (Co, Cf, K, K)  (PyTorch conv weight layout).
    Returns (N, Co, H, W) in float32."""
    N, Cs, H, W = x_s.shape
    Cf = x_f.shape[1]
    Co, _, K, _ = w_s.shape
    pad = (K - 1) // 2  # padding=1 for K=3
    C = Cs + Cf
    KKC = K * K * C

    # --- fuse the two branches (one conv instead of two) ---
    x = jnp.concatenate([x_s, x_f], axis=1)              # (N, C, H, W)
    w = jnp.concatenate([w_s, w_f], axis=1)              # (Co, C, K, K)

    # --- fold inference-mode BatchNorm into weights / bias ---
    # TODO(synk): PyTorch BN in train-mode uses batch statistics; here we fold
    # inference-mode (running) statistics, matching eval semantics.
    inv_std = gamma / jnp.sqrt(run_var + eps)             # (Co,)
    w_folded = w * inv_std[:, None, None, None]           # scale into weights
    bias2d = (beta - run_mean * inv_std).reshape(Co, 1).astype(jnp.float32)

    # --- layout plumbing in the wrapper (im2col), XLA handles it well ---
    x_p = jnp.pad(x, ((0, 0), (0, 0), (pad, pad), (pad, pad)))
    taps = [x_p[:, :, kh:kh + H, kw:kw + W]                # each (N, C, H, W)
            for kh in range(K) for kw in range(K)]
    patches = jnp.stack(taps, axis=0)                      # (K*K, N, C, H, W)
    patches = patches.transpose(0, 2, 1, 3, 4)             # (K*K, C, N, H, W)
    patches = patches.reshape(KKC, N * H * W)              # rows: (kh,kw,c)

    # weight matrix with matching (kh, kw, c) row ordering
    w_mat = w_folded.transpose(0, 2, 3, 1).reshape(Co, KKC)

    patches = patches.astype(compute_dtype)
    w_mat = w_mat.astype(compute_dtype)

    # --- lane tiling: pad flattened spatial axis to a multiple of the tile ---
    LANE = 128
    P = N * H * W
    tile = max(LANE, min(max_tile_lanes, ((P + LANE - 1) // LANE) * LANE))
    P_pad = ((P + tile - 1) // tile) * tile
    if P_pad != P:
        patches = jnp.pad(patches, ((0, 0), (0, P_pad - P)))

    out_flat = pl.pallas_call(
        _conv_bn_kernel,
        out_shape=jax.ShapeDtypeStruct((Co, P_pad), jnp.float32),
        grid_spec=pltpu.PrefetchScalarGridSpec(
            num_scalar_prefetch=0,
            grid=(P_pad // tile,),
            in_specs=[
                pl.BlockSpec((Co, KKC), lambda t: (0, 0)),   # weights (resident)
                pl.BlockSpec((Co, 1), lambda t: (0, 0)),     # BN bias
                pl.BlockSpec((KKC, tile), lambda t: (0, t)),  # patches tile
            ],
            out_specs=pl.BlockSpec((Co, tile), lambda t: (0, t)),
        ),
        compiler_params=pltpu.CompilerParams(
            dimension_semantics=("parallel",)),
    )(w_mat, bias2d, patches)

    out = out_flat[:, :P].reshape(Co, N, H, W)             # lanes were (n,h,w)
    return jnp.transpose(out, (1, 0, 2, 3))                # back to NCHW


def _reference(x_s, x_f, w_s, w_f, gamma, beta, run_mean, run_var, eps=1e-5):
    dn = lax.conv_dimension_numbers(x_s.shape, w_s.shape,
                                    ("NCHW", "OIHW", "NCHW"))
    y = (lax.conv_general_dilated(x_s, w_s, (1, 1), [(1, 1), (1, 1)],
                                  dimension_numbers=dn) +
         lax.conv_general_dilated(x_f, w_f, (1, 1), [(1, 1), (1, 1)],
                                  dimension_numbers=dn))
    inv = gamma / jnp.sqrt(run_var + eps)
    return y * inv[None, :, None, None] + \
        (beta - run_mean * inv)[None, :, None, None]


if __name__ == "__main__":
    # Module config: in_channels=4, out_channels=4, kernel_size=(3,3),
    # alpha=0.5 -> Cs = 4 - int(0.5*4) = 2, Cf = int(0.5*4) = 2
    N, H, W = 2, 16, 16
    in_channels, out_channels, K, alpha = 4, 4, 3, 0.5
    Cf = int(alpha * in_channels)
    Cs = in_channels - Cf

    key = jax.random.PRNGKey(0)
    k1, k2, k3, k4, k5, k6, k7, k8 = jax.random.split(key, 8)
    x_s = jax.random.normal(k1, (N, Cs, H, W), jnp.float32)
    x_f = jax.random.normal(k2, (N, Cf, H, W), jnp.float32)
    w_s = jax.random.normal(k3, (out_channels, Cs, K, K), jnp.float32) * 0.1
    w_f = jax.random.normal(k4, (out_channels, Cf, K, K), jnp.float32) * 0.1
    gamma = 1.0 + 0.1 * jax.random.normal(k5, (out_channels,), jnp.float32)
    beta = 0.1 * jax.random.normal(k6, (out_channels,), jnp.float32)
    run_mean = 0.1 * jax.random.normal(k7, (out_channels,), jnp.float32)
    run_var = jnp.abs(1.0 + 0.1 * jax.random.normal(k8, (out_channels,),
                                                    jnp.float32))

    out = last_sficonvb_forward(x_s, x_f, w_s, w_f, gamma, beta,
                                run_mean, run_var)
    jax.block_until_ready(out)

    ref = _reference(x_s, x_f, w_s, w_f, gamma, beta, run_mean, run_var)
    np.testing.assert_allclose(np.asarray(out), np.asarray(ref),
                               rtol=1e-4, atol=1e-4)
    print("KERNEL_OK")
</pallas_src>

<mosaic_0001>
module attributes {stable_mosaic.version = 11 : i64} {
  func.func @_conv_bn_kernel(%arg0: i32, %arg1: memref<4x36xf32, #tpu.memory_space<vmem>>, %arg2: memref<4x1xf32, #tpu.memory_space<vmem>>, %arg3: memref<36x512xf32, #tpu.memory_space<vmem>>, %arg4: memref<4x512xf32, #tpu.memory_space<vmem>>) attributes {dimension_semantics = [#tpu.dimension_semantics<parallel>], iteration_bounds = array<i64: 1>, scalar_prefetch = 0 : i64, scratch_operands = 0 : i64, tpu.core_type = #tpu.core_type<tc>, window_params = [{pipeline_mode = #tpu.pipeline_mode<synchronous>, transform_indices = @transform_0, window_bounds = array<i64: 4, 36>}, {pipeline_mode = #tpu.pipeline_mode<synchronous>, transform_indices = @transform_1, window_bounds = array<i64: 4, 1>}, {transform_indices = @transform_2, window_bounds = array<i64: 36, 512>}, {transform_indices = @transform_3, window_bounds = array<i64: 4, 512>}]} {
    %c0 = arith.constant 0 : index
    %c0_0 = arith.constant 0 : index
    %0 = vector.load %arg1[%c0, %c0_0] : memref<4x36xf32, #tpu.memory_space<vmem>>, vector<4x36xf32>
    %c0_1 = arith.constant 0 : index
    %c0_2 = arith.constant 0 : index
    %1 = vector.load %arg3[%c0_1, %c0_2] : memref<36x512xf32, #tpu.memory_space<vmem>>, vector<36x512xf32>
    %cst = arith.constant dense<0.000000e+00> : vector<4x512xf32>
    %2 = tpu.matmul %0, %1, %cst {dimension_numbers = #tpu.dot_dimension_numbers<[1], [0], [0], [1], [0, 0, 1, 1], [], []>} : vector<4x36xf32>, vector<36x512xf32>, vector<4x512xf32> -> vector<4x512xf32>
    %c0_3 = arith.constant 0 : index
    %c0_4 = arith.constant 0 : index
    %3 = vector.load %arg2[%c0_3, %c0_4] : memref<4x1xf32, #tpu.memory_space<vmem>>, vector<4x1xf32>
    %4 = vector.broadcast %3 : vector<4x1xf32> to vector<4x512xf32>
    %5 = arith.addf %2, %4 : vector<4x512xf32>
    %c0_5 = arith.constant 0 : index
    %c0_6 = arith.constant 0 : index
    %6 = vector.load %arg4[%c0_5, %c0_6] : memref<4x512xf32, #tpu.memory_space<vmem>>, vector<4x512xf32>
    tpu.vector_store %arg4[%c0_5, %c0_6], %5 {strides = array<i32>} : memref<4x512xf32, #tpu.memory_space<vmem>>, vector<4x512xf32>,
    return
  }
  func.func @transform_0(%arg0: i32) -> (i32, i32) {
    %c0_i32 = arith.constant 0 : i32
    %c0_i32_0 = arith.constant 0 : i32
    %c0_i32_1 = arith.constant 0 : i32
    return %c0_i32, %c0_i32_0 : i32, i32
  }
  func.func @transform_1(%arg0: i32) -> (i32, i32) {
    %c0_i32 = arith.constant 0 : i32
    %c0_i32_0 = arith.constant 0 : i32
    %c0_i32_1 = arith.constant 0 : i32
    return %c0_i32, %c0_i32_0 : i32, i32
  }
  func.func @transform_2(%arg0: i32) -> (i32, i32) {
    %c0_i32 = arith.constant 0 : i32
    %c0_i32_0 = arith.constant 0 : i32
    return %c0_i32, %arg0 : i32, i32
  }
  func.func @transform_3(%arg0: i32) -> (i32, i32) {
    %c0_i32 = arith.constant 0 : i32
    %c0_i32_0 = arith.constant 0 : i32
    return %c0_i32, %arg0 : i32, i32
  }
}

</mosaic_0001>

<bundles_post_ra>
// kernel: tpu_custom_call.1
= control target key start
LH: loop header
LB: loop body
LE: loop exit
PB: predicated region body
PF: predicated region fallthrough
CT: control target
= control target key end

     0   :  { %8 = vsyncpa [#allocation3], 0  ;;  %s297_s0 = inlined_call_operand.vmem [shape: f32[4,36], index: 0, kind: input, shape index: {}]   ;;  %s298_s1 = inlined_call_operand.vmem [shape: f32[4,1], index: 1, kind: input, shape index: {}]   ;;  %s299_s2 = inlined_call_operand.hbm [shape: f32[36,512], index: 2, kind: input, shape index: {}]   ;;  %s300_s3 = inlined_call_operand.hbm [shape: f32[4,512], index: 3, kind: output, shape index: {}]  }
   0x1   :  { %9 = vsyncpa [#allocation4], 0  ;;  %s18_s14 = sshll.u32 %s299_s2, 4  ;;  %s250_s15 = smov [#allocation2]   ;;  %s19_s14 = int_to_ptr.hbm [resolvable:$true] %s18_s14 }
   0x2   :  { %s20_s16 = sshll.u32 %s250_s15, 4  ;;  %s251_s17 = smov 512   ;;  %s21_s16 = int_to_ptr.vmem [resolvable:$true] %s20_s16 }
   0x3   :  { %s252_s18 = smov 32  }
   0x4   :  { %26 = dma.hbm_to_vmem [thread:$0]  %s19_s14, 2560, %s21_s16, [#allocation3], %s251_s17, %s251_s17, %s252_s18  }
   0x5   :  { %246 = dma.done.wait [#allocation3], 2560  }
   0x6   :  { %247 = vsyncadd [#allocation3], 4294964736  ;;  %v253_v0 = vmov 0   ;;  %vm62_vm0 = vcmask 1043456   ;;  %v50_v1 = vld [vmem:[#allocation2 + $0x90] sm:$0xf] }
   0x7   :  { %197 = vset.pattern.permute.xlu0 %v253_v0  ;;  %v51_v2 = vld [vmem:[#allocation2 + $0x98] sm:$0xf]  ;;  %v46_v3 = vld [vmem:[#allocation2 + $0x70] sm:$0xff]  ;;  %188 = vmatpush.msk.msra.mxu2 %vm62_vm0, %v50_v1  ;;  %v49_v5 = vld [vmem:[#allocation2 + $0x88] sm:$0xf]  ;;  %vm58_vm1 = vcmask 293888  }
   0x8   :  { %190 = vmatpush.msk.msra.mxu3 %vm62_vm0, %v51_v2  ;;  %v47_v4 = vld [vmem:[#allocation2 + $0x78] sm:$0xff]  ;;  %v42_v6 = vld [vmem:[#allocation2 + $0x50] sm:$0xff]  ;;  %186 = vmatpush.msk.msra.mxu1 %vm62_vm0, %v49_v5  ;;  %v48_v8 = vld [vmem:[#allocation2 + $0x80] sm:$0xf]  ;;  %s174_s24 = sshll.u32 %s300_s3, 4  ;;  %s175_s24 = int_to_ptr.hbm [resolvable:$true] %s174_s24 }
   0x9   :  { %v43_v7 = vld [vmem:[#allocation2 + $0x58] sm:$0xff]  ;;  %v45_v9 = vld [vmem:[#allocation2 + $0x68] sm:$0xff]  ;;  %127 = vmatpush.msra.mxu2 %v46_v3  ;;  %v44_v10 = vld [vmem:[#allocation2 + $0x60] sm:$0xff]  ;;  %184 = vmatpush.msk.msra.mxu0 %vm62_vm0, %v48_v8 }
   0xa   :  { %147 = vmatpush.msra.mxu3 %v47_v4  ;;  %107 = vmatpush.msra.mxu1 %v45_v9  ;;  %v38_v11 = vld [vmem:[#allocation2 + $0x30] sm:$0xff]  ;;  %v39_v12 = vld [vmem:[#allocation2 + $0x38] sm:$0xff]  ;;  %v41_v13 = vld [vmem:[#allocation2 + $0x48] sm:$0xff] }
   0xb   :  { %128 = vmatpush.msra.mxu2 %v42_v6  ;;  %v40_v14 = vld [vmem:[#allocation2 + $0x40] sm:$0xff]  ;;  %v37_v15 = vld [vmem:[#allocation2 + $0x28] sm:$0xff]  ;;  %87 = vmatpush.msra.mxu0 %v44_v10  ;;  %v34_v16 = vld [vmem:[#allocation2 + $0x10] sm:$0xff] }
   0xc   :  { %148 = vmatpush.msra.mxu3 %v43_v7  ;;  %108 = vmatpush.msra.mxu1 %v41_v13  ;;  %v35_v17 = vld [vmem:[#allocation2 + $0x18] sm:$0xff]  ;;  %v31_v18 = vld [vmem:[%s297_s0] sm:$0xf]  ;;  %v33_v20 = vld [vmem:[#allocation2 + $0x8] sm:$0xff]  ;;  %s254_s0 = smov [#allocation5]  }
   0xd   :  { %129 = vmatpush.msra.mxu2 %v38_v11  ;;  %88 = vmatpush.msra.mxu0 %v40_v14  ;;  %v36_v19 = vld [vmem:[#allocation2 + $0x20] sm:$0xff] }
   0xe   :  { %149 = vmatpush.msra.mxu3 %v39_v12  ;;  %109 = vmatpush.msra.mxu1 %v37_v15  ;;  %v52_v21 = vld [vmem:[%s298_s1] sm:$0xf]  ;;  %s172_s1 = sshll.u32 %s254_s0, 4  ;;  %s173_s1 = int_to_ptr.vmem [resolvable:$true] %s172_s1 }
   0xf   :  { %130 = vmatpush.msra.mxu2 %v34_v16  ;;  %v32_v22 = vld [vmem:[#allocation2] sm:$0xff]  ;;  %89 = vmatpush.msra.mxu0 %v36_v19 }
  0x10   :  { %150 = vmatpush.msra.mxu3 %v35_v17  ;;  %189 = vmatmul.msk.f32.vlgmr.msra.gmra.mxu2 %vm58_vm1, %v31_v18 }
  0x11   :  { %191 = vmatmul.msk.f32.vlgmr.msra.gmra.mxu3 %vm58_vm1, %v31_v18  ;;  %110 = vmatpush.msra.mxu1 %v33_v20 }
  0x12   :  { %187 = vmatmul.msk.f32.vlgmr.msra.gmra.mxu1 %vm58_vm1, %v31_v18  ;;  %55 = vperm.xlu0 %197, %v52_v21  }
  0x13   :  { %90 = vmatpush.msra.mxu0 %v32_v22 }
  0x14   :  { %185 = vmatmul.msk.f32.vlgmr.msra.gmra.mxu0 %vm58_vm1, %v31_v18 }
  0x84   :  { %v56_v23 = vpop.permute.xlu0 %55 }
  0x8f   :  { %v112_v24 = vpop.f32.mrf.mxu1 }
  0x90   :  { %v113_v25 = vadd.f32 %v112_v24, %v56_v23 }
  0x91   :  { %v92_v26 = vpop.f32.mrf.mxu0 }
  0x92   :  { %v159_v27 = vrot.slane %v113_v25, 4  ;;  %v93_v28 = vadd.f32 %v92_v26, %v56_v23 }
  0x93   :  { %v132_v29 = vpop.f32.mrf.mxu2 }
  0x94   :  { %v152_v30 = vpop.f32.mrf.mxu3  ;;  %v161_v31 = vsel %vm62_vm0, %v93_v28, %v159_v27  ;;  %v133_v33 = vadd.f32 %v132_v29, %v56_v23 }
  0x95   :  { %v153_v32 = vadd.f32 %v152_v30, %v56_v23  ;;  %165 = vst [vmem:[#allocation5] sm:$0xff] %v161_v31 }
  0x97   :  { %v160_v34 = vrot.slane %v153_v32, 4 }
  0x99   :  { %v162_v35 = vsel %vm62_vm0, %v133_v33, %v160_v34 }
  0x9a   :  { %166 = vst [vmem:[#allocation5 + $0x8] sm:$0xff] %v162_v35 }
  0x9b   :  { %177 = dma.vmem_to_hbm [thread:$0]  %s173_s1, 256, %s175_s24, [#allocation4]  }
  0x9c   :  { %248 = dma.done.wait [#allocation4], 256  }
  0x9d   :  { %249 = vsyncadd [#allocation4], 4294967040 }
  0x9e   :  { %182 = vsyncpa [#allocation3], 1 }
  0x9f   :  { %183 = vsyncpa [#allocation4], 1 }

</bundles_post_ra>
